<compile_context>
chip_gen: v7x
topology: tpu7x:2x2x1
jax: 0.10.0
libtpu: 0.0.40
codegen_flags: <defaults>
</compile_context>

<pallas_src>
import jax
import jax.numpy as jnp
import numpy as np
from jax import lax
from jax.experimental import pallas as pl
from jax.experimental.pallas import tpu as pltpu


def _round_up(x, m):
    return ((x + m - 1) // m) * m


def _pick_tile(n, preferred=(512, 256, 128)):
    for t in preferred:
        if n % t == 0:
            return t
    return n  # small inputs: single full-extent tile


def _vmem_limit(est_bytes):
    return int(min(max(32 * 1024 * 1024, 2 * est_bytes), 56 * 1024 * 1024))


# ----------------------------------------------------------------------------
# Pass 1: fused 1x1-conv projections  [g | phi | theta] = x @ W + b
# ----------------------------------------------------------------------------
def _projection_kernel(x_ref, w_ref, b_ref, theta_ref, gphi_ref):
    cip = theta_ref.shape[-1]  # padded inter_channels (static)
    xb = x_ref[...].astype(jnp.bfloat16)                               # (tn, Cp)
    proj = jnp.dot(xb, w_ref[...],
                   preferred_element_type=jnp.float32) + b_ref[...]    # (tn, 3*Cip)
    gphi_ref[...] = proj[:, :2 * cip].astype(gphi_ref.dtype)           # [g | phi]
    theta_ref[...] = proj[:, 2 * cip:].astype(theta_ref.dtype)         # theta


# ----------------------------------------------------------------------------
# Pass 2: flash-style attention + W projection + residual
# ----------------------------------------------------------------------------
def _flash_attn_kernel(xq_ref, th_ref, gphi_ref, ww_ref, bw_ref, out_ref,
                       m_sc, l_sc, acc_sc):
    ki = pl.program_id(2)
    cip = acc_sc.shape[-1]  # padded inter_channels (static)

    @pl.when(ki == 0)
    def _init():
        m_sc[...] = jnp.full(m_sc.shape, -jnp.inf, jnp.float32)
        l_sc[...] = jnp.zeros(l_sc.shape, jnp.float32)
        acc_sc[...] = jnp.zeros(acc_sc.shape, jnp.float32)

    gphi = gphi_ref[...]                 # (tk, 2*Cip) bf16, lane-aligned slices
    g_kv = gphi[:, :cip]                 # (tk, Cip)
    phi = gphi[:, cip:]                  # (tk, Cip)

    # Scores (tq, tk) = theta @ phi^T, contracting last dims (no transpose).
    s = lax.dot_general(th_ref[...], phi,
                        dimension_numbers=(((1,), (1,)), ((), ())),
                        preferred_element_type=jnp.float32)

    # Online softmax update (f32 accumulators).
    m_prev = m_sc[...]
    m_new = jnp.maximum(m_prev, jnp.max(s, axis=-1, keepdims=True))
    alpha = jnp.exp(m_prev - m_new)
    p = jnp.exp(s - m_new)
    l_sc[...] = alpha * l_sc[...] + jnp.sum(p, axis=-1, keepdims=True)
    acc_sc[...] = alpha * acc_sc[...] + jnp.dot(
        p.astype(jnp.bfloat16), g_kv, preferred_element_type=jnp.float32)
    m_sc[...] = m_new

    @pl.when(ki == pl.num_programs(2) - 1)
    def _finalize():
        y = acc_sc[...] * pl.reciprocal(l_sc[...], approx=True)        # (tq, Cip)
        w_y = jnp.dot(y.astype(jnp.bfloat16), ww_ref[...],
                      preferred_element_type=jnp.float32) + bw_ref[...]  # (tq, Cp)
        out_ref[...] = (w_y + xq_ref[...]).astype(out_ref.dtype)       # residual


def non_local_block(x, params, *, q_tile=None, kv_tile=None):
    """x: (B, C, H, W) NCHW float32.  Returns (B, C, H, W) matching the
    PyTorch module's forward (output = W(y) + x)."""
    B, C, H, W = x.shape
    N = H * W
    Ci = params["wg"].shape[1]
    Cp = _round_up(C, 128)
    Cip = _round_up(Ci, 128)

    tq = q_tile if q_tile is not None else _pick_tile(N)
    tk = kv_tile if kv_tile is not None else _pick_tile(N)
    assert N % tq == 0 and N % tk == 0, "H*W must be divisible by the tile sizes"
    # TODO(synk): ragged N (not divisible by the tiles) would need kv masking in
    # the online softmax; not needed for the shapes used here.

    # NCHW -> (B, N, C) channel-last, zero-padded to a lane-dense channel count.
    x_flat = jnp.transpose(x, (0, 2, 3, 1)).reshape(B, N, C).astype(jnp.float32)
    if Cp != C:
        x_flat = jnp.pad(x_flat, ((0, 0), (0, 0), (0, Cp - C)))

    def pad2(a, r, c):
        a = a.astype(jnp.float32)
        return jnp.pad(a, ((0, r - a.shape[0]), (0, c - a.shape[1])))

    # Fused projection weight / bias, column layout [g | phi | theta].
    w_gpt = jnp.concatenate([pad2(params["wg"], Cp, Cip),
                             pad2(params["wp"], Cp, Cip),
                             pad2(params["wt"], Cp, Cip)], axis=1).astype(jnp.bfloat16)
    b_gpt = jnp.concatenate([pad2(params["bg"], 1, Cip),
                             pad2(params["bp"], 1, Cip),
                             pad2(params["bt"], 1, Cip)], axis=1)
    ww = pad2(params["ww"], Cip, Cp).astype(jnp.bfloat16)
    bw = pad2(params["bw"], 1, Cp)

    # ---------------- Pass 1: projections ----------------
    tn = _pick_tile(N)
    n_tiles = N // tn
    proj_spec = pltpu.PrefetchScalarGridSpec(
        num_scalar_prefetch=0,
        grid=(B, n_tiles),
        in_specs=[
            pl.BlockSpec((pl.Squeezed(), tn, Cp), lambda b, i: (b, i, 0)),
            pl.BlockSpec((Cp, 3 * Cip), lambda b, i: (0, 0)),
            pl.BlockSpec((1, 3 * Cip), lambda b, i: (0, 0)),
        ],
        out_specs=[
            pl.BlockSpec((pl.Squeezed(), tn, Cip), lambda b, i: (b, i, 0)),
            pl.BlockSpec((pl.Squeezed(), tn, 2 * Cip), lambda b, i: (b, i, 0)),
        ],
    )
    proj_est = (4 * 2 * tn * Cp                     # x window (double buffered)
                + 2 * 2 * Cp * 3 * Cip              # fused weight
                + 4 * 2 * 3 * Cip                   # fused bias
                + 2 * 2 * tn * 3 * Cip              # bf16 outputs
                + 4 * tn * 3 * Cip)                 # f32 projection temporary
    theta, gphi = pl.pallas_call(
        _projection_kernel,
        out_shape=(jax.ShapeDtypeStruct((B, N, Cip), jnp.bfloat16),
                   jax.ShapeDtypeStruct((B, N, 2 * Cip), jnp.bfloat16)),
        grid_spec=proj_spec,
        compiler_params=pltpu.CompilerParams(
            dimension_semantics=("parallel", "parallel"),
            vmem_limit_bytes=_vmem_limit(proj_est)),
    )(x_flat, w_gpt, b_gpt)

    # ---------------- Pass 2: flash attention + W + residual ----------------
    nq, nk = N // tq, N // tk
    full2d = lambda shape: pl.BlockSpec(shape, lambda b, qi, ki: (0, 0))
    flash_spec = pltpu.PrefetchScalarGridSpec(
        num_scalar_prefetch=0,
        grid=(B, nq, nk),
        in_specs=[
            pl.BlockSpec((pl.Squeezed(), tq, Cp), lambda b, qi, ki: (b, qi, 0)),   # x (residual)
            pl.BlockSpec((pl.Squeezed(), tq, Cip), lambda b, qi, ki: (b, qi, 0)),  # theta q-tile
            pl.BlockSpec((pl.Squeezed(), tk, 2 * Cip), lambda b, qi, ki: (b, ki, 0)),  # [g|phi] kv-tile
            full2d((Cip, Cp)),   # W weight (grid-invariant)
            full2d((1, Cp)),     # W bias
        ],
        out_specs=pl.BlockSpec((pl.Squeezed(), tq, Cp), lambda b, qi, ki: (b, qi, 0)),
        scratch_shapes=[
            pltpu.VMEM((tq, 1), jnp.float32),     # running max
            pltpu.VMEM((tq, 1), jnp.float32),     # running denominator
            pltpu.VMEM((tq, Cip), jnp.float32),   # output accumulator
        ],
    )
    flash_est = (4 * 2 * tq * Cp                   # x window
                 + 2 * 2 * tq * Cip                # theta window
                 + 2 * 2 * tk * 2 * Cip            # [g|phi] window
                 + 2 * 2 * Cip * Cp + 4 * 2 * Cp   # W weight / bias
                 + 4 * 2 * tq * Cp                 # out window
                 + 4 * tq * (Cip + 2)              # scratch
                 + 4 * 3 * tq * tk)                # score / prob temporaries
    out_flat = pl.pallas_call(
        _flash_attn_kernel,
        out_shape=jax.ShapeDtypeStruct((B, N, Cp), jnp.float32),
        grid_spec=flash_spec,
        compiler_params=pltpu.CompilerParams(
            dimension_semantics=("parallel", "parallel", "arbitrary"),
            vmem_limit_bytes=_vmem_limit(flash_est)),
    )(x_flat, theta, gphi, ww, bw)

    out = out_flat[:, :, :C].reshape(B, H, W, C)
    return jnp.transpose(out, (0, 3, 1, 2))


def non_local_block_ref(x, params):
    """Pure-JAX f32 reference mirroring the PyTorch forward exactly."""
    B, C, H, W = x.shape
    N = H * W
    xf = jnp.transpose(x, (0, 2, 3, 1)).reshape(B, N, C).astype(jnp.float32)
    g_x = xf @ params["wg"] + params["bg"]
    theta_x = xf @ params["wt"] + params["bt"]
    phi_x = xf @ params["wp"] + params["bp"]
    f = jnp.einsum("bnc,bmc->bnm", theta_x, phi_x)
    attn = jax.nn.softmax(f, axis=-1)
    y = jnp.einsum("bnm,bmc->bnc", attn, g_x)
    w_y = y @ params["ww"] + params["bw"]
    out = w_y + xf
    return jnp.transpose(out.reshape(B, H, W, C), (0, 3, 1, 2))


def make_params(key, in_channels, inter_channels):
    """1x1 conv weights stored as (in, out) matmul matrices.
    NOTE: the PyTorch module zero-inits W (the block starts as an identity
    residual); here W is random so the check below actually exercises the
    full attention path. The forward computation itself is unchanged."""
    ks = jax.random.split(key, 8)
    scale = 0.1
    C, Ci = in_channels, inter_channels
    return {
        "wg": scale * jax.random.normal(ks[0], (C, Ci), jnp.float32),
        "bg": scale * jax.random.normal(ks[1], (1, Ci), jnp.float32),
        "wt": scale * jax.random.normal(ks[2], (C, Ci), jnp.float32),
        "bt": scale * jax.random.normal(ks[3], (1, Ci), jnp.float32),
        "wp": scale * jax.random.normal(ks[4], (C, Ci), jnp.float32),
        "bp": scale * jax.random.normal(ks[5], (1, Ci), jnp.float32),
        "ww": scale * jax.random.normal(ks[6], (Ci, C), jnp.float32),
        "bw": scale * jax.random.normal(ks[7], (1, C), jnp.float32),
    }


if __name__ == "__main__":
    B, C, H, W = 2, 4, 16, 16
    inter_channels = 2

    key = jax.random.PRNGKey(0)
    kx, kp = jax.random.split(key)
    x = jax.random.normal(kx, (B, C, H, W), jnp.float32)
    params = make_params(kp, C, inter_channels)

    # Force 128-sized tiles so the test covers multiple online-softmax kv steps
    # (N = 256 -> 2 q-tiles x 2 kv-tiles per batch element).
    out = non_local_block(x, params, q_tile=128, kv_tile=128)
    out = jax.block_until_ready(out)

    out_ref = non_local_block_ref(x, params)
    np.testing.assert_allclose(np.asarray(out), np.asarray(out_ref), rtol=1e-2, atol=1e-2)

    print("KERNEL_OK")
</pallas_src>

<mosaic_0001>
module attributes {stable_mosaic.version = 11 : i64} {
  func.func @_projection_kernel(%arg0: i32, %arg1: i32, %arg2: memref<1x256x128xf32, #tpu.memory_space<vmem>>, %arg3: memref<128x384xbf16, #tpu.memory_space<vmem>>, %arg4: memref<1x384xf32, #tpu.memory_space<vmem>>, %arg5: memref<1x256x128xbf16, #tpu.memory_space<vmem>>, %arg6: memref<1x256x256xbf16, #tpu.memory_space<vmem>>) attributes {dimension_semantics = [#tpu.dimension_semantics<parallel>, #tpu.dimension_semantics<parallel>], iteration_bounds = array<i64: 2, 1>, scalar_prefetch = 0 : i64, scratch_operands = 0 : i64, tpu.core_type = #tpu.core_type<tc>, window_params = [{transform_indices = @transform_0, window_bounds = array<i64: 1, 256, 128>}, {pipeline_mode = #tpu.pipeline_mode<synchronous>, transform_indices = @transform_1, window_bounds = array<i64: 128, 384>}, {pipeline_mode = #tpu.pipeline_mode<synchronous>, transform_indices = @transform_2, window_bounds = array<i64: 1, 384>}, {transform_indices = @transform_3, window_bounds = array<i64: 1, 256, 128>}, {transform_indices = @transform_4, window_bounds = array<i64: 1, 256, 256>}]} {
    %c0 = arith.constant 0 : index
    %c0_0 = arith.constant 0 : index
    %c0_1 = arith.constant 0 : index
    %0 = vector.load %arg2[%c0, %c0_0, %c0_1] : memref<1x256x128xf32, #tpu.memory_space<vmem>>, vector<1x256x128xf32>
    %1 = vector.shape_cast %0 : vector<1x256x128xf32> to vector<256x128xf32>
    %2 = arith.truncf %1 : vector<256x128xf32> to vector<256x128xbf16>
    %c0_2 = arith.constant 0 : index
    %c0_3 = arith.constant 0 : index
    %3 = vector.load %arg3[%c0_2, %c0_3] : memref<128x384xbf16, #tpu.memory_space<vmem>>, vector<128x384xbf16>
    %cst = arith.constant dense<0.000000e+00> : vector<256x384xf32>
    %4 = tpu.matmul %2, %3, %cst {dimension_numbers = #tpu.dot_dimension_numbers<[1], [0], [0], [1], [0, 0, 1, 1], [], []>} : vector<256x128xbf16>, vector<128x384xbf16>, vector<256x384xf32> -> vector<256x384xf32>
    %c0_4 = arith.constant 0 : index
    %c0_5 = arith.constant 0 : index
    %5 = vector.load %arg4[%c0_4, %c0_5] : memref<1x384xf32, #tpu.memory_space<vmem>>, vector<1x384xf32>
    %6 = vector.broadcast %5 : vector<1x384xf32> to vector<256x384xf32>
    %7 = arith.addf %4, %6 : vector<256x384xf32>
    %8 = vector.extract_strided_slice %7 {offsets = [0, 0], sizes = [256, 256], strides = [1, 1]} : vector<256x384xf32> to vector<256x256xf32>
    %9 = arith.truncf %8 : vector<256x256xf32> to vector<256x256xbf16>
    %c0_6 = arith.constant 0 : index
    %c0_7 = arith.constant 0 : index
    %c0_8 = arith.constant 0 : index
    %10 = vector.load %arg6[%c0_6, %c0_7, %c0_8] : memref<1x256x256xbf16, #tpu.memory_space<vmem>>, vector<1x256x256xbf16>
    %11 = vector.shape_cast %10 : vector<1x256x256xbf16> to vector<256x256xbf16>
    %12 = vector.shape_cast %9 : vector<256x256xbf16> to vector<1x256x256xbf16>
    tpu.vector_store %arg6[%c0_6, %c0_7, %c0_8], %12 {strides = array<i32>} : memref<1x256x256xbf16, #tpu.memory_space<vmem>>, vector<1x256x256xbf16>,
    %13 = vector.extract_strided_slice %7 {offsets = [0, 256], sizes = [256, 128], strides = [1, 1]} : vector<256x384xf32> to vector<256x128xf32>
    %14 = arith.truncf %13 : vector<256x128xf32> to vector<256x128xbf16>
    %c0_9 = arith.constant 0 : index
    %c0_10 = arith.constant 0 : index
    %c0_11 = arith.constant 0 : index
    %15 = vector.load %arg5[%c0_9, %c0_10, %c0_11] : memref<1x256x128xbf16, #tpu.memory_space<vmem>>, vector<1x256x128xbf16>
    %16 = vector.shape_cast %15 : vector<1x256x128xbf16> to vector<256x128xbf16>
    %17 = vector.shape_cast %14 : vector<256x128xbf16> to vector<1x256x128xbf16>
    tpu.vector_store %arg5[%c0_9, %c0_10, %c0_11], %17 {strides = array<i32>} : memref<1x256x128xbf16, #tpu.memory_space<vmem>>, vector<1x256x128xbf16>,
    return
  }
  func.func @transform_0(%arg0: i32, %arg1: i32) -> (i32, i32, i32) {
    %c0_i32 = arith.constant 0 : i32
    %c0_i32_0 = arith.constant 0 : i32
    return %arg0, %arg1, %c0_i32 : i32, i32, i32
  }
  func.func @transform_1(%arg0: i32, %arg1: i32) -> (i32, i32) {
    %c0_i32 = arith.constant 0 : i32
    %c0_i32_0 = arith.constant 0 : i32
    %c0_i32_1 = arith.constant 0 : i32
    return %c0_i32, %c0_i32_0 : i32, i32
  }
  func.func @transform_2(%arg0: i32, %arg1: i32) -> (i32, i32) {
    %c0_i32 = arith.constant 0 : i32
    %c0_i32_0 = arith.constant 0 : i32
    %c0_i32_1 = arith.constant 0 : i32
    return %c0_i32, %c0_i32_0 : i32, i32
  }
  func.func @transform_3(%arg0: i32, %arg1: i32) -> (i32, i32, i32) {
    %c0_i32 = arith.constant 0 : i32
    %c0_i32_0 = arith.constant 0 : i32
    return %arg0, %arg1, %c0_i32 : i32, i32, i32
  }
  func.func @transform_4(%arg0: i32, %arg1: i32) -> (i32, i32, i32) {
    %c0_i32 = arith.constant 0 : i32
    %c0_i32_0 = arith.constant 0 : i32
    return %arg0, %arg1, %c0_i32 : i32, i32, i32
  }
}

</mosaic_0001>

<bundles_post_ra>
// kernel: tpu_custom_call.1
= control target key start
LH: loop header
LB: loop body
LE: loop exit
PB: predicated region body
PF: predicated region fallthrough
CT: control target
= control target key end

     0   :  { %10 = vsyncpa [#allocation3], 0  ;;  %s2586_s0 = inlined_call_operand.hbm [shape: f32[2,256,128], index: 0, kind: input, shape index: {}]   ;;  %s2587_s1 = inlined_call_operand.hbm [shape: bf16[128,384], index: 1, kind: input, shape index: {}]   ;;  %s2588_s2 = inlined_call_operand.vmem [shape: f32[1,384], index: 2, kind: input, shape index: {}]   ;;  %s2589_s3 = inlined_call_operand.hbm [shape: bf16[2,256,128], index: 3, kind: output, shape index: {0}]   ;;  %s2590_s4 = inlined_call_operand.hbm [shape: bf16[2,256,256], index: 4, kind: output, shape index: {1}]  }
   0x1   :  { %12 = vsyncpa [#allocation3 + $0x1], 0 }
   0x2   :  { %13 = vsyncpa [#allocation6], 0 }
   0x3   :  { %14 = vsyncpa [#allocation4], 0 }
   0x4   :  { %16 = vsyncpa [#allocation4 + $0x1], 0 }
   0x5   :  { %17 = vsyncpa [#allocation9], 0 }
   0x6   :  { %19 = vsyncpa [#allocation9 + $0x1], 0  ;;  %s2095_s15 = smov 0   ;;  %s2097_s16 = smov 0  }
   0x7   :  { %s2099_s17 = smov 0   ;;  %s2101_s18 = smov 0  }
   0x8   :  { %s2103_s19 = smov 0   ;;  %s2105_s20 = smov 0  }
   0x9 LB: > { %s1401_s21 = sadd.s32 4294967295, %s2055_s20   ;;  %s1402_s22 = sadd.s32 4294967294, %s2055_s20   ;;  %s2055_s20 = sphi %s2105_s20, %s25_s20   ;;  %s2051_s19 = sphi %s2103_s19, %s2614_s19   ;;  %s2047_s18 = sphi %s2101_s18, %s2613_s18   ;;  %s2043_s17 = sphi %s2099_s17, %s2612_s17   ;;  %s2039_s16 = sphi %s2097_s16, %s2611_s16   ;;  %s2035_s15 = sphi %s2095_s15, %s2610_s15  }
   0xa   : > { %p59_p0 = scmp.ne.s32.totalorder %s2039_s16, %s2035_s15  ;;  %p2129_p1 = scmp.eq.s32.totalorder %s1401_s21, 0 }
   0xb   : > { %p2133_p2 = scmp.eq.s32.totalorder %s1401_s21, 1  ;;  %p133_p3 = scmp.eq.s32.totalorder %s1402_s22, 1 }
   0xc   : > { %s2595_s23 = scalar_select %p2129_p1, 1, 0 }
   0xd   : > { %s2596_s24 = scalar_select %p2133_p2, 1, 0 }
   0xe   : > { %p2139_p4 = por %p2129_p1, %p59_p0  ;;  %p1403_p5 = scmp.ge.s32.totalorder %s2055_s20, 1 }
   0xf   : > { %p2144_p6 = por %p133_p3, %p59_p0  ;;  %p168_p7 = scmp.lt.s32.totalorder %s2055_s20, 3 }
  0x10   : > { %s2597_s25 = scalar_select %p2139_p4, 1, 0 }
  0x11   : > { %s2598_s26 = scalar_select %p2144_p6, 1, 0 }
  0x12   : > { %p2149_p8 = pnand %p1403_p5, %p168_p7  ;;  %s2057_s28 = smov [#allocation5]  }
  0x13   : > { %s180_s29 = sshll.u32 %s2057_s28, 4  ;;  %s37_s5 = sadd.s32 1, %s2051_s19  ;;  %s181_s29 = int_to_ptr.vmem [resolvable:$true] %s180_s29 }
  0x14   : > { %s2599_s27 = scalar_select %p2149_p8, 1, 0 }
  0x15   : > { %p1770_p9 = pneg %p2149_p8  ;;  %s1879_s8 = scalar_lea.hbm %s2587_s1, 3072 }
  0x16   : > { %p1880_p12 = scmp.ne.s32.totalorder %s2587_s1, %s1879_s8  ;;  %p1886_p5 = scmp.lt.u32.totalorder %s1879_s8, %s2587_s1 }
  0x17   : > { %p2158_p11 = pnand %p1770_p9, %p2129_p1 }
  0x19   : > { %p1881_p13 = pneg %p2158_p11 }
  0x1b   : > { %p1882_p0 = pnand %p1881_p13, %p1880_p12 }
  0x1d   : > { %p1883_p3 = pneg %p1882_p0 }
  0x1f   : > { %p1888_p7 = pnand %p1886_p5, %p1883_p3 }
  0x21   : > { %1891 = shalt.err (!%p1888_p7)
}
  0x22   : > { %s1892_s13 = scalar_lea.vmem %s181_s29, 3072  ;;  %p1900_p1 = scmp.lt.s32.totalorder %s181_s29, %s181_s29 }
  0x23   : > { %p1893_p9 = scmp.ne.s32.totalorder %s181_s29, %s1892_s13  ;;  %p1901_p4 = scmp.lt.s32.totalorder %s1892_s13, %s1892_s13 }
  0x25   : > { %p1895_p10 = pnand %p1893_p9, %p1881_p13  ;;  %p1902_p8 = por %p1901_p4, %p1900_p1 }
  0x27   : > { %p1896_p6 = pneg %p1895_p10 }
  0x29   : > { %p1903_p2 = pnand %p1902_p8, %p1896_p6 }
  0x2b   : > { %1906 = shalt.err (!%p1903_p2)
}
  0x2c   : > { %s2058_s14 = smov 192   ;;  %s2059_s21 = smov 12  }
  0x2d   : > { %1773 = dma.hbm_to_vmem [thread:$0]  (!%p2158_p11), %s2587_s1, 3072, %s181_s29, [#allocation6], %s2058_s14, %s2058_s14, %s2059_s21  }
  0x2e   : > { %p39_p1 = scmp.ge.s32.totalorder %s37_s5, 2  ;;  %s46_s6 = sadd.s32 1, %s2043_s17 }
  0x2f   : > { %p53_p2 = scmp.ne.s32.totalorder %s2043_s17, %s2039_s16  ;;  %p54_p4 = scmp.eq.s32.totalorder %s2055_s20, 0 }
  0x30   : > { %s2616_s5 = smov (%p39_p1, %s37_s5), 0  ;;  %p2602_p8 = scmp.ne.s32.totalorder %s2596_s24, 0 }
  0x31   : > { %p2185_p6 = por %p54_p4, %p53_p2  ;;  %s41_s30 = ssub.s32 %s2051_s19, %s2616_s5 }
  0x32   : > { %p2191_p10 = por %p2602_p8, %p53_p2  ;;  %p1786_p12 = scmp.lt.s32.totalorder %s2055_s20, 2 }
  0x33   : > { %p44_p11 = scmp.eq.s32.totalorder %s41_s30, 0  ;;  %s197_s29 = sand.u32 1, %s2043_s17  }
  0x34   : > { %s1406_s9 = sshll.u32 %s197_s29, 8  ;;  %s1510_s11 = sshll.u32 %s2051_s19, 12 }
  0x35   : > { %s2200_s10 = scalar_select %p44_p11, %s2043_s17, %s46_s6  }
  0x36   : > { %s2206_s14 = scalar_lea.hbm %s2586_s0, %s1510_s11  ;;  %s201_s24 = scalar_lea.vmem [#allocation2], %s1406_s9 }
  0x37   : > { %s210_s21 = sshll.u32 %s201_s24, 4  ;;  %p2212_p13 = pnand %p1786_p12, %p2185_p6  ;;  %s2208_s21 = int_to_ptr.vmem [resolvable:$true] %s210_s21 }
  0x38   : > { %s2216_s28 = scalar_lea.sflag [#allocation3], %s197_s29  ;;  %s1907_s6 = scalar_lea.hbm %s2206_s14, 4096 }
  0x39   : > { %p1908_p0 = scmp.ne.s32.totalorder %s2206_s14, %s1907_s6  ;;  %p1909_p3 = pneg %p2212_p13 }
  0x3a   : > { %s1912_s7 = scalar_lea.hbm %s2586_s0, 8192  ;;  %p1913_p9 = scmp.lt.u32.totalorder %s2206_s14, %s2586_s0 }
  0x3b   : > { %p1910_p5 = pnand %p1909_p3, %p1908_p0  ;;  %p1914_p1 = scmp.lt.u32.totalorder %s1912_s7, %s1907_s6 }
  0x3c   : > { %p1916_p4 = scmp.lt.u32.totalorder %s1907_s6, %s2206_s14 }
  0x3d   : > { %p1911_p7 = pneg %p1910_p5  ;;  %p1915_p2 = por %p1914_p1, %p1913_p9 }
  0x3f   : > { %p1917_p6 = por %p1916_p4, %p1915_p2 }
  0x41   : > { %p1918_p8 = pnand %p1917_p6, %p1911_p7 }
  0x43   : > { %1921 = shalt.err (!%p1918_p8)
}
  0x44   : > { %s1922_s29 = scalar_lea.vmem %s2208_s21, 4096  ;;  %s2060_s13 = smov [#allocation2]  }
  0x45   : > { %p1923_p12 = scmp.ne.s32.totalorder %s2208_s21, %s1922_s29  ;;  %s1927_s24 = sshll.u32 %s2060_s13, 4  ;;  %s1928_s24 = int_to_ptr.vmem [resolvable:$false] %s1927_s24 }
  0x46   : > { %s1929_s30 = scalar_lea.vmem %s1928_s24, 8192  ;;  %p1930_p5 = scmp.lt.s32.totalorder %s2208_s21, %s1928_s24 }
  0x47   : > { %p1925_p11 = pnand %p1923_p12, %p1909_p3  ;;  %p1931_p9 = scmp.lt.s32.totalorder %s1929_s30, %s1922_s29 }
  0x49   : > { %p1926_p0 = pneg %p1925_p11  ;;  %p1932_p1 = por %p1931_p9, %p1930_p5 }
  0x4b   : > { %p1933_p2 = pnand %p1932_p1, %p1926_p0 }
  0x4d   : > { %1936 = shalt.err (!%p1933_p2)
}
  0x4e   : > { %s2061_s6 = smov 128   ;;  %s2062_s9 = smov 8  }
  0x4f   : > { %1777 = dma.hbm_to_vmem [thread:$0]  (!%p2212_p13), %s2206_s14, 4096, %s2208_s21, %s2216_s28, %s2061_s6, %s2061_s6, %s2062_s9  }
  0x50   : > { %p2605_p3 = scmp.ne.s32.totalorder %s2599_s27, 0 }
  0x51   : > { %s2247_s7 = sand.u32 (!%p2605_p3), 1, %s2039_s16   ;;  %p2606_p7 = scmp.ne.s32.totalorder (!%p2605_p3), %s2597_s25, 0 }
  0x52   : > { %222 = sbr.rel (%p2605_p3) target bundleno = 473 (0x1d9), region = 32  ;;  %s1410_s11 = sshll.u32 (!%p2605_p3), %s2247_s7, 8 }
  0x53   : > { %s225_s12 = scalar_lea.sflag (!%p2605_p3), [#allocation3], %s2247_s7  ;;  %s2253_s29 = scalar_lea.vmem (!%p2605_p3), [#allocation2], %s1410_s11 }
  0x59   : > { %2018 = dma.done.wait (%p2606_p7), %s225_s12, 4096  }
  0x5a   : > { %2020 = vsyncadd (%p2606_p7), %s225_s12, 4294963200  ;;  %p2607_p13 = scmp.ne.s32.totalorder %s2595_s23, 0 }
  0x5c   : > { %2022 = dma.done.wait (%p2607_p13), [#allocation6], 3072  }
  0x5d   : > { %2024 = vsyncadd (%p2607_p13), [#allocation6], 4294964224  ;;  %v2063_v0 = vmov 0   ;;  %v1847_v1 = vld [vmem:[#allocation5 + $0x4] ss:$12 sps:$4 sm:$0xff]   ;;  %v267_v18 = vld [vmem:[%s2253_s29 + $0x8] sm:$0xff] }
  0x5e   : > { %523 = vmatprep.mubr.bf16.mxu0 %v2063_v0  ;;  %643 = vmatprep.mubr.bf16.mxu1 %v2063_v0  ;;  %v1849_v2 = vld [vmem:[#allocation5] ss:$12 sps:$4 sm:$0xff]   ;;  %v1850_v3 = vld [vmem:[#allocation5 + $0x1c] ss:$12 sps:$4 sm:$0xff]   ;;  %v1852_v4 = vld [vmem:[#allocation5 + $0x18] ss:$12 sps:$4 sm:$0xff]  }
  0x5f   : > { %491 = vmatprep.subr.bf16.mxu0 %v1847_v1  ;;  %1744 = vmatprep.subr.bf16.mxu1 %v1847_v1  ;;  %v1853_v5 = vld [vmem:[#allocation5 + $0x34] ss:$12 sps:$4 sm:$0xff]   ;;  %v1855_v6 = vld [vmem:[#allocation5 + $0x30] ss:$12 sps:$4 sm:$0xff]   ;;  %v1856_v7 = vld [vmem:[#allocation5 + $0x4c] ss:$12 sps:$4 sm:$0xff]  }
  0x60   : > { %492 = vmatpush1.bf16.msra.mxu0 %v1849_v2  ;;  %1752 = vmatpush1.bf16.msra.mxu1 %v1849_v2  ;;  %v1858_v8 = vld [vmem:[#allocation5 + $0x48] ss:$12 sps:$4 sm:$0xff]   ;;  %v1859_v9 = vld [vmem:[#allocation5 + $0x64] ss:$12 sps:$4 sm:$0xff]   ;;  %v1861_v10 = vld [vmem:[#allocation5 + $0x60] ss:$12 sps:$4 sm:$0xff]  }
  0x61   : > { %493 = vmatprep.subr.bf16.mxu0 %v1850_v3  ;;  %1745 = vmatprep.subr.bf16.mxu1 %v1850_v3  ;;  %v1862_v11 = vld [vmem:[#allocation5 + $0x7c] ss:$12 sps:$4 sm:$0xff]   ;;  %v1864_v12 = vld [vmem:[#allocation5 + $0x78] ss:$12 sps:$4 sm:$0xff]   ;;  %v1865_v13 = vld [vmem:[#allocation5 + $0x94] ss:$12 sps:$4 sm:$0xff]  }
  0x62   : > { %v1867_v14 = vld [vmem:[#allocation5 + $0x90] ss:$12 sps:$4 sm:$0xff]   ;;  %v1868_v15 = vld [vmem:[#allocation5 + $0xac] ss:$12 sps:$4 sm:$0xff]   ;;  %v1870_v16 = vld [vmem:[#allocation5 + $0xa8] ss:$12 sps:$4 sm:$0xff]  }
  0x63   : > { %v266_v17 = vld [vmem:[%s2253_s29] sm:$0xff]  ;;  %v291_v20 = vld [vmem:[%s2253_s29 + $0xc8] sm:$0xff]  ;;  %v268_v25 = vld [vmem:[%s2253_s29 + $0x10] sm:$0xff]  ;;  %s2352_s27 = scalar_lea.vmem [#allocation8], %s1410_s11  ;;  %s1412_s14 = sshll.u32 %s2247_s7, 7 }
  0x64   : > { %494 = vmatpush1.bf16.msra.mxu0 %v1852_v4  ;;  %1753 = vmatpush1.bf16.msra.mxu1 %v1852_v4  ;;  %v290_v19 = vld [vmem:[%s2253_s29 + $0xc0] sm:$0xff]  ;;  %v1871_v21 = vld [vmem:[#allocation5 + $0x8] ss:$12 sps:$4 sm:$0xff]   ;;  %v298_v22 = vpack.c.bf16 %v267_v18, %v266_v17  ;;  %v269_v26 = vld [vmem:[%s2253_s29 + $0x18] sm:$0xff]  ;;  %s2408_s21 = scalar_lea.vmem [#allocation7], %s1412_s14  ;;  %s1575_s22 = sshll.u32 %s2047_s18, 11 }
  0x65   : > { %495 = vmatprep.subr.bf16.mxu0 %v1853_v5  ;;  %1746 = vmatprep.subr.bf16.mxu1 %v1853_v5  ;;  %v2269_v23 = vpack.c.bf16 %v291_v20, %v290_v19  ;;  %v1872_v24 = vld [vmem:[#allocation5 + $0x20] ss:$12 sps:$4 sm:$0xff]   ;;  %v292_v27 = vld [vmem:[%s2253_s29 + $0xd0] sm:$0xff]  ;;  %v293_v28 = vld [vmem:[%s2253_s29 + $0xd8] sm:$0xff]  ;;  %v299_v30 = vpack.c.bf16 %v269_v26, %v268_v25  ;;  %s1250_s28 = sshll.u32 %s2408_s21, 4  ;;  %s2492_s30 = scalar_lea.hbm %s2589_s3, %s1575_s22  ;;  %s2502_s28 = int_to_ptr.vmem [resolvable:$true] %s1250_s28 }
  0x66   : > { %v1873_v29 = vld [vmem:[#allocation5 + $0x38] ss:$12 sps:$4 sm:$0xff]   ;;  %v2278_v31 = vpack.c.bf16 %v293_v28, %v292_v27  ;;  %v1874_v32 = vld [vmem:[#allocation5 + $0x50] ss:$12 sps:$4 sm:$0xff]   ;;  %v271_v34 = vld [vmem:[%s2253_s29 + $0x28] sm:$0xff]  ;;  %s1576_s6 = sshll.u32 %s2047_s18, 12 }
  0x67   : > { %v270_v33 = vld [vmem:[%s2253_s29 + $0x20] sm:$0xff]  ;;  %v295_v36 = vld [vmem:[%s2253_s29 + $0xe8] sm:$0xff]  ;;  %v272_v41 = vld [vmem:[%s2253_s29 + $0x30] sm:$0xff]  ;;  %s1269_s9 = sshll.u32 %s2352_s27, 4  ;;  %s2508_s12 = scalar_lea.hbm %s2590_s4, %s1576_s6  ;;  %s2510_s9 = int_to_ptr.vmem [resolvable:$true] %s1269_s9 }
  0x68   : > { %496 = vmatpush1.bf16.msra.mxu0 %v1855_v6  ;;  %1754 = vmatpush1.bf16.msra.mxu1 %v1855_v6  ;;  %v294_v35 = vld [vmem:[%s2253_s29 + $0xe0] sm:$0xff]  ;;  %v1875_v37 = vld [vmem:[#allocation5 + $0x68] ss:$12 sps:$4 sm:$0xff]   ;;  %v300_v38 = vpack.c.bf16 %v271_v34, %v270_v33  ;;  %v273_v42 = vld [vmem:[%s2253_s29 + $0x38] sm:$0xff]  ;;  %s1937_s23 = scalar_lea.vmem %s2502_s28, 2048  ;;  %s2064_s25 = smov [#allocation7]  }
  0x69   : > { %497 = vmatprep.subr.bf16.mxu0 %v1856_v7  ;;  %1747 = vmatprep.subr.bf16.mxu1 %v1856_v7  ;;  %v2287_v39 = vpack.c.bf16 %v295_v36, %v294_v35  ;;  %v1876_v40 = vld [vmem:[#allocation5 + $0x80] ss:$12 sps:$4 sm:$0xff]   ;;  %v296_v43 = vld [vmem:[%s2253_s29 + $0xf0] sm:$0xff]  ;;  %v297_v44 = vld [vmem:[%s2253_s29 + $0xf8] sm:$0xff]  ;;  %v301_v46 = vpack.c.bf16 %v273_v42, %v272_v41  ;;  %p1938_p4 = scmp.ne.s32.totalorder %s2502_s28, %s1937_s23  ;;  %s1941_s14 = sshll.u32 %s2064_s25, 4  ;;  %s1942_s14 = int_to_ptr.vmem [resolvable:$false] %s1941_s14 }
  0x6a   : > { %v1877_v45 = vld [vmem:[#allocation5 + $0x98] ss:$12 sps:$4 sm:$0xff]   ;;  %v2296_v47 = vpack.c.bf16 %v297_v44, %v296_v43  ;;  %v1878_v48 = vld [vmem:[#allocation5 + $0xb0] ss:$12 sps:$4 sm:$0xff]   ;;  %v275_v50 = vld [vmem:[%s2253_s29 + $0x48] sm:$0xff]  ;;  %s1943_s22 = scalar_lea.vmem %s1942_s14, 4096  ;;  %p1944_p12 = scmp.lt.s32.totalorder %s2502_s28, %s1942_s14 }
  0x6b   : > { %v274_v49 = vld [vmem:[%s2253_s29 + $0x40] sm:$0xff]  ;;  %v276_v52 = vld [vmem:[%s2253_s29 + $0x50] sm:$0xff]  ;;  %v277_v53 = vld [vmem:[%s2253_s29 + $0x58] sm:$0xff]  ;;  %p1939_p6 = pnand %p1938_p4, %p2191_p10  ;;  %p1945_p11 = scmp.lt.s32.totalorder %s1943_s22, %s1937_s23 }
  0x6c   : > { %498 = vmatpush1.bf16.msra.mxu0 %v1858_v8  ;;  %1755 = vmatpush1.bf16.msra.mxu1 %v1858_v8  ;;  %v302_v51 = vpack.c.bf16 %v275_v50, %v274_v49  ;;  %v303_v54 = vpack.c.bf16 %v277_v53, %v276_v52  ;;  %v278_v55 = vld [vmem:[%s2253_s29 + $0x60] sm:$0xff]  ;;  %v279_v56 = vld [vmem:[%s2253_s29 + $0x68] sm:$0xff]  ;;  %v280_v58 = vld [vmem:[%s2253_s29 + $0x70] sm:$0xff] }
  0x6d   : > { %499 = vmatprep.subr.bf16.mxu0 %v1859_v9  ;;  %1748 = vmatprep.subr.bf16.mxu1 %v1859_v9  ;;  %v304_v57 = vpack.c.bf16 %v279_v56, %v278_v55  ;;  %v281_v59 = vld [vmem:[%s2253_s29 + $0x78] sm:$0xff]  ;;  %v282_v60 = vld [vmem:[%s2253_s29 + $0x80] sm:$0xff]  ;;  %v283_v61 = vld [vmem:[%s2253_s29 + $0x88] sm:$0xff]  ;;  %p1940_p8 = pneg %p1939_p6  ;;  %p1946_p0 = por %p1945_p11, %p1944_p12 }
  0x6e   : > { %v305_v62 = vpack.c.bf16 %v281_v59, %v280_v58  ;;  %v306_v63 = vpack.c.bf16 %v283_v61, %v282_v60  ;;  %v284_v1 = vld [vmem:[%s2253_s29 + $0x90] sm:$0xff]  ;;  %v285_v2 = vld [vmem:[%s2253_s29 + $0x98] sm:$0xff]  ;;  %v286_v3 = vld [vmem:[%s2253_s29 + $0xa0] sm:$0xff] }
  0x6f   : > { %v287_v4 = vld [vmem:[%s2253_s29 + $0xa8] sm:$0xff]  ;;  %v307_v5 = vpack.c.bf16 %v285_v2, %v284_v1  ;;  %v288_v7 = vld [vmem:[%s2253_s29 + $0xb0] sm:$0xff]  ;;  %v289_v8 = vld [vmem:[%s2253_s29 + $0xb8] sm:$0xff]  ;;  %s1230_s29 = scalar_lea.sflag [#allocation4], %s2247_s7  ;;  %p1947_p5 = pnand %p1946_p0, %p1940_p8 }
  0x70   : > { %500 = vmatpush1.bf16.msra.mxu0 %v1861_v10  ;;  %1756 = vmatpush1.bf16.msra.mxu1 %v1861_v10  ;;  %v308_v6 = vpack.c.bf16 %v287_v4, %v286_v3  ;;  %v309_v9 = vpack.c.bf16 %v289_v8, %v288_v7  ;;  %v348_v10 = vlaneseq }
  0x71   : > { %501 = vmatprep.subr.bf16.mxu0 %v1862_v11  ;;  %1749 = vmatprep.subr.bf16.mxu1 %v1862_v11 }
  0x72   : > { %v2327_v11 = vshrl.u32 %v348_v10, 7 }
  0x74   : > { %502 = vmatpush1.bf16.msra.mxu0 %v1864_v12  ;;  %1757 = vmatpush1.bf16.msra.mxu1 %v1864_v12  ;;  %v350_v12 = vsub.s32 0, %v2327_v11 }
  0x75   : > { %503 = vmatprep.subr.bf16.mxu0 %v1865_v13  ;;  %1750 = vmatprep.subr.bf16.mxu1 %v1865_v13  ;;  %v2333_v13 = vld [vmem:[%s2588_s2] sm:$0x7] }
  0x78   : > { %504 = vmatpush1.bf16.msra.mxu0 %v1867_v14  ;;  %1758 = vmatpush1.bf16.msra.mxu1 %v1867_v14  ;;  %v354_v14 = vsub.s32 1, %v2327_v11 }
  0x79   : > { %505 = vmatprep.subr.bf16.mxu0 %v1868_v15  ;;  %1751 = vmatprep.subr.bf16.mxu1 %v1868_v15  ;;  %v2337_v15 = vrot.slane %v2333_v13, %v350_v12 }
  0x7c   : > { %506 = vmatpush1.bf16.msra.mxu0 %v1870_v16  ;;  %1759 = vmatpush1.bf16.msra.mxu1 %v1870_v16 }
  0x7d   : > { %1696 = vmatprep.subr.bf16.mxu1 %v1871_v21 }
  0x7f   : > { %524 = vmatmul.mubr.bf16.vlgmr.msra.gmra.mrb[0].mxu0 %v298_v22  ;;  %644 = vmatmul.mubr.bf16.vlgmr.msra.gmra.mrb[0].mxu1 %v2269_v23 }
  0x80   : > { %1697 = vmatpush3.bf16.msra.mxu1 %v1871_v21  ;;  %533 = vmatprep.mubr.bf16.mxu0 %v2063_v0 }
  0x81   : > { %1698 = vmatprep.subr.bf16.mxu1 %v1872_v24  ;;  %653 = vmatprep.mubr.bf16.mxu1 %v2063_v0 }
  0x84   : > { %1699 = vmatpush3.bf16.msra.mxu1 %v1872_v24 }
  0x85   : > { %1700 = vmatprep.subr.bf16.mxu1 %v1873_v29 }
  0x87   : > { %534 = vmatmul.mubr.bf16.gmra.mrb[4].mxu0 %v299_v30  ;;  %654 = vmatmul.mubr.bf16.gmra.mrb[4].mxu1 %v2278_v31 }
  0x88   : > { %1701 = vmatpush3.bf16.msra.mxu1 %v1873_v29  ;;  %543 = vmatprep.mubr.bf16.mxu0 %v2063_v0 }
  0x89   : > { %1702 = vmatprep.subr.bf16.mxu1 %v1874_v32  ;;  %663 = vmatprep.mubr.bf16.mxu1 %v2063_v0 }
  0x8c   : > { %1703 = vmatpush3.bf16.msra.mxu1 %v1874_v32 }
  0x8d   : > { %1704 = vmatprep.subr.bf16.mxu1 %v1875_v37 }
  0x8f   : > { %544 = vmatmul.mubr.bf16.gmra.mrb[8].mxu0 %v300_v38  ;;  %664 = vmatmul.mubr.bf16.gmra.mrb[8].mxu1 %v2287_v39 }
  0x90   : > { %1705 = vmatpush3.bf16.msra.mxu1 %v1875_v37  ;;  %553 = vmatprep.mubr.bf16.mxu0 %v2063_v0 }
  0x91   : > { %1706 = vmatprep.subr.bf16.mxu1 %v1876_v40  ;;  %673 = vmatprep.mubr.bf16.mxu1 %v2063_v0 }
  0x94   : > { %1707 = vmatpush3.bf16.msra.mxu1 %v1876_v40 }
  0x95   : > { %1708 = vmatprep.subr.bf16.mxu1 %v1877_v45 }
  0x97   : > { %554 = vmatmul.mubr.bf16.gmra.mrb[12].mxu0 %v301_v46  ;;  %674 = vmatmul.mubr.bf16.gmra.mrb[12].mxu1 %v2296_v47 }
  0x98   : > { %1709 = vmatpush3.bf16.msra.mxu1 %v1877_v45  ;;  %563 = vmatprep.mubr.bf16.mxu0 %v2063_v0 }
  0x99   : > { %1710 = vmatprep.subr.bf16.mxu1 %v1878_v48  ;;  %1712 = vmatprep.mubr.bf16.mxu1 %v298_v22 }
  0x9c   : > { %1711 = vmatpush3.bf16.msra.mxu1 %v1878_v48 }
  0x9f   : > { %564 = vmatmul.mubr.bf16.gmra.mrb[16].mxu0 %v302_v51  ;;  %1713 = vmatmul.mubr.bf16.vlgmr.msra.gmra.mrb[16].mxu1 %v299_v30 }
  0xa0   : > { %573 = vmatprep.mubr.bf16.mxu0 %v2063_v0  ;;  %1716 = vmatprep.mubr.bf16.mxu1 %v300_v38 }
  0xa7   : > { %574 = vmatmul.mubr.bf16.gmra.mrb[20].mxu0 %v303_v54  ;;  %1717 = vmatmul.mubr.bf16.gmra.mrb[20].mxu1 %v301_v46 }
  0xa8   : > { %583 = vmatprep.mubr.bf16.mxu0 %v2063_v0  ;;  %1720 = vmatprep.mubr.bf16.mxu1 %v302_v51 }
  0xaf   : > { %584 = vmatmul.mubr.bf16.gmra.mrb[24].mxu0 %v304_v57  ;;  %1721 = vmatmul.mubr.bf16.gmra.mrb[24].mxu1 %v303_v54 }
  0xb0   : > { %593 = vmatprep.mubr.bf16.mxu0 %v2063_v0  ;;  %1724 = vmatprep.mubr.bf16.mxu1 %v304_v57 }
  0xb7   : > { %594 = vmatmul.mubr.bf16.gmra.mrb[28].mxu0 %v305_v62  ;;  %1725 = vmatmul.mubr.bf16.gmra.mrb[28].mxu1 %v305_v62 }
  0xb8   : > { %603 = vmatprep.mubr.bf16.mxu0 %v2063_v0  ;;  %1728 = vmatprep.mubr.bf16.mxu1 %v306_v63 }
  0xbf   : > { %604 = vmatmul.mubr.bf16.gmra.mrb[32].mxu0 %v306_v63  ;;  %1729 = vmatmul.mubr.bf16.gmra.mrb[32].mxu1 %v307_v5 }
  0xc0   : > { %613 = vmatprep.mubr.bf16.mxu0 %v2063_v0  ;;  %1732 = vmatprep.mubr.bf16.mxu1 %v308_v6 }
  0xc7   : > { %614 = vmatmul.mubr.bf16.gmra.mrb[36].mxu0 %v307_v5  ;;  %1733 = vmatmul.mubr.bf16.gmra.mrb[36].mxu1 %v309_v9 }
  0xc8   : > { %623 = vmatprep.mubr.bf16.mxu0 %v2063_v0  ;;  %1736 = vmatprep.mubr.bf16.mxu1 %v2269_v23 }
  0xcf   : > { %624 = vmatmul.mubr.bf16.gmra.mrb[40].mxu0 %v308_v6  ;;  %1737 = vmatmul.mubr.bf16.gmra.mrb[40].mxu1 %v2278_v31 }
  0xd0   : > { %633 = vmatprep.mubr.bf16.mxu0 %v2063_v0  ;;  %1740 = vmatprep.mubr.bf16.mxu1 %v2287_v39  ;;  %v2340_v0 = vrot.slane %v2333_v13, %v354_v14 }
  0xd7   : > { %634 = vmatmul.mubr.bf16.gmra.mrb[44].mxu0 %v309_v9  ;;  %1741 = vmatmul.mubr.bf16.gmra.mrb[44].mxu1 %v2296_v47 }
 0x152   : > { %v525_v16 = vpop.f32.mrb[0].mxu0  ;;  %v645_v17 = vpop.f32.mrb[0].mxu1 }
 0x153   : > { %v526_v18 = vadd.f32 %v525_v16, %v2337_v15  ;;  %v646_v19 = vadd.f32 %v645_v17, %v2337_v15  ;;  %v527_v20 = vpop.f32.mrb[1].mxu0  ;;  %v647_v21 = vpop.f32.mrb[1].mxu1 }
 0x154   : > { %v528_v22 = vadd.f32 %v527_v20, %v2340_v0  ;;  %v648_v23 = vadd.f32 %v647_v21, %v2340_v0  ;;  %v529_v24 = vpop.f32.mrb[2].mxu0  ;;  %v649_v25 = vpop.f32.mrb[2].mxu1 }
 0x155   : > { %v530_v26 = vadd.f32 %v529_v24, %v2337_v15  ;;  %v650_v27 = vadd.f32 %v649_v25, %v2337_v15  ;;  %v531_v28 = vpop.f32.mrb[3].mxu0  ;;  %v651_v29 = vpop.f32.mrb[3].mxu1 }
 0x156   : > { %v1511_v30 = vpack.c.bf16 %v528_v22, %v526_v18  ;;  %v1535_v31 = vpack.c.bf16 %v648_v23, %v646_v19  ;;  %v532_v32 = vadd.f32 %v531_v28, %v2340_v0  ;;  %v652_v33 = vadd.f32 %v651_v29, %v2340_v0 }
 0x158   : > { %1037 = vst [vmem:[%s2352_s27] sm:$0xff] %v1511_v30  ;;  %1061 = vst [vmem:[%s2352_s27 + $0xc0] sm:$0xff] %v1535_v31  ;;  %v1512_v34 = vpack.c.bf16 %v532_v32, %v530_v26  ;;  %v1536_v35 = vpack.c.bf16 %v652_v33, %v650_v27  ;;  %v358_v30 = vsub.s32 2, %v2327_v11 }
 0x15a   : > { %1038 = vst [vmem:[%s2352_s27 + $0x8] sm:$0xff] %v1512_v34  ;;  %1062 = vst [vmem:[%s2352_s27 + $0xc8] sm:$0xff] %v1536_v35  ;;  %v535_v36 = vpop.f32.mrb[4].mxu0  ;;  %v655_v37 = vpop.f32.mrb[4].mxu1 }
 0x15b   : > { %v536_v38 = vadd.f32 %v535_v36, %v2337_v15  ;;  %v656_v39 = vadd.f32 %v655_v37, %v2337_v15  ;;  %v537_v40 = vpop.f32.mrb[5].mxu0  ;;  %v657_v41 = vpop.f32.mrb[5].mxu1  ;;  %v2394_v37 = vrot.slane %v2333_v13, %v358_v30 }
 0x15c   : > { %v538_v42 = vadd.f32 %v537_v40, %v2340_v0  ;;  %v658_v43 = vadd.f32 %v657_v41, %v2340_v0  ;;  %v539_v44 = vpop.f32.mrb[6].mxu0  ;;  %v659_v45 = vpop.f32.mrb[6].mxu1 }
 0x15d   : > { %v540_v46 = vadd.f32 %v539_v44, %v2337_v15  ;;  %v660_v47 = vadd.f32 %v659_v45, %v2337_v15  ;;  %v541_v48 = vpop.f32.mrb[7].mxu0  ;;  %v661_v49 = vpop.f32.mrb[7].mxu1 }
 0x15e   : > { %v1513_v50 = vpack.c.bf16 %v538_v42, %v536_v38  ;;  %v1537_v51 = vpack.c.bf16 %v658_v43, %v656_v39  ;;  %v542_v52 = vadd.f32 %v541_v48, %v2340_v0  ;;  %v662_v53 = vadd.f32 %v661_v49, %v2340_v0 }
 0x160   : > { %1039 = vst [vmem:[%s2352_s27 + $0x10] sm:$0xff] %v1513_v50  ;;  %1063 = vst [vmem:[%s2352_s27 + $0xd0] sm:$0xff] %v1537_v51  ;;  %v1514_v54 = vpack.c.bf16 %v542_v52, %v540_v46  ;;  %v1538_v55 = vpack.c.bf16 %v662_v53, %v660_v47 }
 0x162   : > { %1040 = vst [vmem:[%s2352_s27 + $0x18] sm:$0xff] %v1514_v54  ;;  %1064 = vst [vmem:[%s2352_s27 + $0xd8] sm:$0xff] %v1538_v55  ;;  %v545_v56 = vpop.f32.mrb[8].mxu0  ;;  %v665_v57 = vpop.f32.mrb[8].mxu1 }
 0x163   : > { %v546_v58 = vadd.f32 %v545_v56, %v2337_v15  ;;  %v666_v59 = vadd.f32 %v665_v57, %v2337_v15  ;;  %v547_v60 = vpop.f32.mrb[9].mxu0  ;;  %v667_v61 = vpop.f32.mrb[9].mxu1 }
 0x164   : > { %v548_v62 = vadd.f32 %v547_v60, %v2340_v0  ;;  %v668_v63 = vadd.f32 %v667_v61, %v2340_v0  ;;  %v549_v1 = vpop.f32.mrb[10].mxu0  ;;  %v669_v2 = vpop.f32.mrb[10].mxu1 }
 0x165   : > { %v550_v3 = vadd.f32 %v549_v1, %v2337_v15  ;;  %v670_v4 = vadd.f32 %v669_v2, %v2337_v15  ;;  %v551_v5 = vpop.f32.mrb[11].mxu0  ;;  %v671_v6 = vpop.f32.mrb[11].mxu1 }
 0x166   : > { %v1515_v7 = vpack.c.bf16 %v548_v62, %v546_v58  ;;  %v1539_v8 = vpack.c.bf16 %v668_v63, %v666_v59  ;;  %v552_v9 = vadd.f32 %v551_v5, %v2340_v0  ;;  %v672_v10 = vadd.f32 %v671_v6, %v2340_v0 }
 0x168   : > { %1041 = vst [vmem:[%s2352_s27 + $0x20] sm:$0xff] %v1515_v7  ;;  %1065 = vst [vmem:[%s2352_s27 + $0xe0] sm:$0xff] %v1539_v8  ;;  %v1516_v12 = vpack.c.bf16 %v552_v9, %v550_v3  ;;  %v1540_v14 = vpack.c.bf16 %v672_v10, %v670_v4 }
 0x16a   : > { %1042 = vst [vmem:[%s2352_s27 + $0x28] sm:$0xff] %v1516_v12  ;;  %1066 = vst [vmem:[%s2352_s27 + $0xe8] sm:$0xff] %v1540_v14  ;;  %v555_v16 = vpop.f32.mrb[12].mxu0  ;;  %v675_v17 = vpop.f32.mrb[12].mxu1 }
 0x16b   : > { %v556_v18 = vadd.f32 %v555_v16, %v2337_v15  ;;  %v676_v19 = vadd.f32 %v675_v17, %v2337_v15  ;;  %v557_v20 = vpop.f32.mrb[13].mxu0  ;;  %v677_v21 = vpop.f32.mrb[13].mxu1 }
 0x16c   : > { %v558_v22 = vadd.f32 %v557_v20, %v2340_v0  ;;  %v678_v23 = vadd.f32 %v677_v21, %v2340_v0  ;;  %v559_v24 = vpop.f32.mrb[14].mxu0  ;;  %v679_v25 = vpop.f32.mrb[14].mxu1 }
 0x16d   : > { %v560_v26 = vadd.f32 %v559_v24, %v2337_v15  ;;  %v680_v27 = vadd.f32 %v679_v25, %v2337_v15  ;;  %v561_v28 = vpop.f32.mrb[15].mxu0  ;;  %v681_v29 = vpop.f32.mrb[15].mxu1 }
 0x16e   : > { %v1517_v31 = vpack.c.bf16 %v558_v22, %v556_v18  ;;  %v1541_v32 = vpack.c.bf16 %v678_v23, %v676_v19  ;;  %v562_v33 = vadd.f32 %v561_v28, %v2340_v0  ;;  %v682_v34 = vadd.f32 %v681_v29, %v2340_v0 }
 0x170   : > { %1043 = vst [vmem:[%s2352_s27 + $0x30] sm:$0xff] %v1517_v31  ;;  %1067 = vst [vmem:[%s2352_s27 + $0xf0] sm:$0xff] %v1541_v32  ;;  %v1518_v35 = vpack.c.bf16 %v562_v33, %v560_v26  ;;  %v1542_v36 = vpack.c.bf16 %v682_v34, %v680_v27 }
 0x172   : > { %1044 = vst [vmem:[%s2352_s27 + $0x38] sm:$0xff] %v1518_v35  ;;  %1068 = vst [vmem:[%s2352_s27 + $0xf8] sm:$0xff] %v1542_v36  ;;  %v565_v38 = vpop.f32.mrb[16].mxu0  ;;  %v1714_v39 = vpop.f32.mrb[16].mxu1 }
 0x173   : > { %v566_v11 = vadd.f32 %v565_v38, %v2337_v15  ;;  %v567_v40 = vpop.f32.mrb[17].mxu0  ;;  %v718_v41 = vpop.f32.mrb[17].mxu1  ;;  %v727_v45 = vadd.f32 %v1714_v39, %v2394_v37 }
 0x174   : > { %v568_v42 = vadd.f32 %v567_v40, %v2340_v0  ;;  %v569_v43 = vpop.f32.mrb[18].mxu0  ;;  %v1715_v44 = vpop.f32.mrb[18].mxu1  ;;  %v719_v50 = vadd.f32 %v718_v41, %v2394_v37 }
 0x175   : > { %v570_v13 = vadd.f32 %v569_v43, %v2337_v15  ;;  %v730_v46 = vadd.f32 %v1715_v44, %v2394_v37  ;;  %v571_v47 = vpop.f32.mrb[19].mxu0  ;;  %v721_v48 = vpop.f32.mrb[19].mxu1 }
 0x176   : > { %v1519_v49 = vpack.c.bf16 %v568_v42, %v566_v11  ;;  %v572_v51 = vadd.f32 %v571_v47, %v2340_v0  ;;  %v722_v52 = vadd.f32 %v721_v48, %v2394_v37 }
 0x177   : > { %v1585_v53 = vpack.c.bf16 %v730_v46, %v727_v45 }
 0x178   : > { %1045 = vst [vmem:[%s2352_s27 + $0x40] sm:$0xff] %v1519_v49  ;;  %v1520_v54 = vpack.c.bf16 %v572_v51, %v570_v13  ;;  %v1580_v55 = vpack.c.bf16 %v722_v52, %v719_v50 }
 0x179   : > { %1657 = vst [vmem:[%s2408_s21 + $0x8] sm:$0xff] %v1585_v53  }
 0x17a   : > { %1046 = vst [vmem:[%s2352_s27 + $0x48] sm:$0xff] %v1520_v54  ;;  %1581 = vst [vmem:[%s2408_s21] sm:$0xff] %v1580_v55   ;;  %v575_v56 = vpop.f32.mrb[20].mxu0  ;;  %v1718_v57 = vpop.f32.mrb[20].mxu1 }
 0x17b   : > { %v576_v58 = vadd.f32 %v575_v56, %v2337_v15  ;;  %v577_v59 = vpop.f32.mrb[21].mxu0  ;;  %v734_v60 = vpop.f32.mrb[21].mxu1  ;;  %v743_v1 = vadd.f32 %v1718_v57, %v2394_v37 }
 0x17c   : > { %v578_v61 = vadd.f32 %v577_v59, %v2340_v0  ;;  %v579_v62 = vpop.f32.mrb[22].mxu0  ;;  %v1719_v63 = vpop.f32.mrb[22].mxu1  ;;  %v735_v7 = vadd.f32 %v734_v60, %v2394_v37 }
 0x17d   : > { %v580_v2 = vadd.f32 %v579_v62, %v2337_v15  ;;  %v746_v3 = vadd.f32 %v1719_v63, %v2394_v37  ;;  %v581_v4 = vpop.f32.mrb[23].mxu0  ;;  %v737_v5 = vpop.f32.mrb[23].mxu1 }
 0x17e   : > { %v1521_v6 = vpack.c.bf16 %v578_v61, %v576_v58  ;;  %v582_v8 = vadd.f32 %v581_v4, %v2340_v0  ;;  %v738_v9 = vadd.f32 %v737_v5, %v2394_v37 }
 0x17f   : > { %v1595_v10 = vpack.c.bf16 %v746_v3, %v743_v1 }
 0x180   : > { %1047 = vst [vmem:[%s2352_s27 + $0x50] sm:$0xff] %v1521_v6  ;;  %v1522_v12 = vpack.c.bf16 %v582_v8, %v580_v2  ;;  %v1590_v14 = vpack.c.bf16 %v738_v9, %v735_v7 }
 0x181   : > { %1659 = vst [vmem:[%s2408_s21 + $0x18] sm:$0xff] %v1595_v10  }
 0x182   : > { %1048 = vst [vmem:[%s2352_s27 + $0x58] sm:$0xff] %v1522_v12  ;;  %1658 = vst [vmem:[%s2408_s21 + $0x10] sm:$0xff] %v1590_v14   ;;  %v585_v16 = vpop.f32.mrb[24].mxu0  ;;  %v1722_v17 = vpop.f32.mrb[24].mxu1 }
 0x183   : > { %v586_v18 = vadd.f32 %v585_v16, %v2337_v15  ;;  %v587_v19 = vpop.f32.mrb[25].mxu0  ;;  %v750_v20 = vpop.f32.mrb[25].mxu1  ;;  %v759_v24 = vadd.f32 %v1722_v17, %v2394_v37 }
 0x184   : > { %v588_v21 = vadd.f32 %v587_v19, %v2340_v0  ;;  %v589_v22 = vpop.f32.mrb[26].mxu0  ;;  %v1723_v23 = vpop.f32.mrb[26].mxu1  ;;  %v751_v30 = vadd.f32 %v750_v20, %v2394_v37 }
 0x185   : > { %v590_v25 = vadd.f32 %v589_v22, %v2337_v15  ;;  %v762_v26 = vadd.f32 %v1723_v23, %v2394_v37  ;;  %v591_v27 = vpop.f32.mrb[27].mxu0  ;;  %v753_v28 = vpop.f32.mrb[27].mxu1 }
 0x186   : > { %v1523_v29 = vpack.c.bf16 %v588_v21, %v586_v18  ;;  %v592_v31 = vadd.f32 %v591_v27, %v2340_v0  ;;  %v754_v32 = vadd.f32 %v753_v28, %v2394_v37 }
 0x187   : > { %v1605_v33 = vpack.c.bf16 %v762_v26, %v759_v24 }
 0x188   : > { %1049 = vst [vmem:[%s2352_s27 + $0x60] sm:$0xff] %v1523_v29  ;;  %v1524_v34 = vpack.c.bf16 %v592_v31, %v590_v25  ;;  %v1600_v35 = vpack.c.bf16 %v754_v32, %v751_v30 }
 0x189   : > { %1661 = vst [vmem:[%s2408_s21 + $0x28] sm:$0xff] %v1605_v33  }
 0x18a   : > { %1050 = vst [vmem:[%s2352_s27 + $0x68] sm:$0xff] %v1524_v34  ;;  %1660 = vst [vmem:[%s2408_s21 + $0x20] sm:$0xff] %v1600_v35   ;;  %v595_v36 = vpop.f32.mrb[28].mxu0  ;;  %v1726_v38 = vpop.f32.mrb[28].mxu1 }
 0x18b   : > { %v596_v39 = vadd.f32 %v595_v36, %v2337_v15  ;;  %v597_v11 = vpop.f32.mrb[29].mxu0  ;;  %v766_v40 = vpop.f32.mrb[29].mxu1  ;;  %v775_v44 = vadd.f32 %v1726_v38, %v2394_v37 }
 0x18c   : > { %v598_v41 = vadd.f32 %v597_v11, %v2340_v0  ;;  %v599_v42 = vpop.f32.mrb[30].mxu0  ;;  %v1727_v43 = vpop.f32.mrb[30].mxu1  ;;  %v767_v49 = vadd.f32 %v766_v40, %v2394_v37 }
 0x18d   : > { %v600_v45 = vadd.f32 %v599_v42, %v2337_v15  ;;  %v778_v13 = vadd.f32 %v1727_v43, %v2394_v37  ;;  %v601_v46 = vpop.f32.mrb[31].mxu0  ;;  %v769_v47 = vpop.f32.mrb[31].mxu1 }
 0x18e   : > { %v1525_v48 = vpack.c.bf16 %v598_v41, %v596_v39  ;;  %v602_v50 = vadd.f32 %v601_v46, %v2340_v0  ;;  %v770_v51 = vadd.f32 %v769_v47, %v2394_v37 }
 0x18f   : > { %v1615_v52 = vpack.c.bf16 %v778_v13, %v775_v44 }
 0x190   : > { %1051 = vst [vmem:[%s2352_s27 + $0x70] sm:$0xff] %v1525_v48  ;;  %v1526_v53 = vpack.c.bf16 %v602_v50, %v600_v45  ;;  %v1610_v54 = vpack.c.bf16 %v770_v51, %v767_v49 }
 0x191   : > { %1663 = vst [vmem:[%s2408_s21 + $0x38] sm:$0xff] %v1615_v52  }
 0x192   : > { %1052 = vst [vmem:[%s2352_s27 + $0x78] sm:$0xff] %v1526_v53  ;;  %1662 = vst [vmem:[%s2408_s21 + $0x30] sm:$0xff] %v1610_v54   ;;  %v605_v55 = vpop.f32.mrb[32].mxu0  ;;  %v1730_v56 = vpop.f32.mrb[32].mxu1 }
 0x193   : > { %v606_v57 = vadd.f32 %v605_v55, %v2337_v15  ;;  %v607_v58 = vpop.f32.mrb[33].mxu0  ;;  %v782_v59 = vpop.f32.mrb[33].mxu1  ;;  %v791_v63 = vadd.f32 %v1730_v56, %v2394_v37 }
 0x194   : > { %v608_v60 = vadd.f32 %v607_v58, %v2340_v0  ;;  %v609_v61 = vpop.f32.mrb[34].mxu0  ;;  %v1731_v62 = vpop.f32.mrb[34].mxu1  ;;  %v783_v6 = vadd.f32 %v782_v59, %v2394_v37 }
 0x195   : > { %v610_v1 = vadd.f32 %v609_v61, %v2337_v15  ;;  %v794_v2 = vadd.f32 %v1731_v62, %v2394_v37  ;;  %v611_v3 = vpop.f32.mrb[35].mxu0  ;;  %v785_v4 = vpop.f32.mrb[35].mxu1 }
 0x196   : > { %v1527_v5 = vpack.c.bf16 %v608_v60, %v606_v57  ;;  %v612_v7 = vadd.f32 %v611_v3, %v2340_v0  ;;  %v786_v8 = vadd.f32 %v785_v4, %v2394_v37 }
 0x197   : > { %v1625_v9 = vpack.c.bf16 %v794_v2, %v791_v63 }
 0x198   : > { %1053 = vst [vmem:[%s2352_s27 + $0x80] sm:$0xff] %v1527_v5  ;;  %v1528_v10 = vpack.c.bf16 %v612_v7, %v610_v1  ;;  %v1620_v12 = vpack.c.bf16 %v786_v8, %v783_v6 }
 0x199   : > { %1665 = vst [vmem:[%s2408_s21 + $0x48] sm:$0xff] %v1625_v9  }
 0x19a   : > { %1054 = vst [vmem:[%s2352_s27 + $0x88] sm:$0xff] %v1528_v10  ;;  %1664 = vst [vmem:[%s2408_s21 + $0x40] sm:$0xff] %v1620_v12   ;;  %v615_v14 = vpop.f32.mrb[36].mxu0  ;;  %v1734_v16 = vpop.f32.mrb[36].mxu1 }
 0x19b   : > { %v616_v17 = vadd.f32 %v615_v14, %v2337_v15  ;;  %v617_v18 = vpop.f32.mrb[37].mxu0  ;;  %v798_v19 = vpop.f32.mrb[37].mxu1  ;;  %v807_v23 = vadd.f32 %v1734_v16, %v2394_v37 }
 0x19c   : > { %v618_v20 = vadd.f32 %v617_v18, %v2340_v0  ;;  %v619_v21 = vpop.f32.mrb[38].mxu0  ;;  %v1735_v22 = vpop.f32.mrb[38].mxu1  ;;  %v799_v29 = vadd.f32 %v798_v19, %v2394_v37 }
 0x19d   : > { %v620_v24 = vadd.f32 %v619_v21, %v2337_v15  ;;  %v810_v25 = vadd.f32 %v1735_v22, %v2394_v37  ;;  %v621_v26 = vpop.f32.mrb[39].mxu0  ;;  %v801_v27 = vpop.f32.mrb[39].mxu1 }
 0x19e   : > { %v1529_v28 = vpack.c.bf16 %v618_v20, %v616_v17  ;;  %v622_v30 = vadd.f32 %v621_v26, %v2340_v0  ;;  %v802_v31 = vadd.f32 %v801_v27, %v2394_v37 }
 0x19f   : > { %v1635_v32 = vpack.c.bf16 %v810_v25, %v807_v23 }
 0x1a0   : > { %1055 = vst [vmem:[%s2352_s27 + $0x90] sm:$0xff] %v1529_v28  ;;  %v1530_v33 = vpack.c.bf16 %v622_v30, %v620_v24  ;;  %v1630_v34 = vpack.c.bf16 %v802_v31, %v799_v29 }
 0x1a1   : > { %1667 = vst [vmem:[%s2408_s21 + $0x58] sm:$0xff] %v1635_v32  }
 0x1a2   : > { %1056 = vst [vmem:[%s2352_s27 + $0x98] sm:$0xff] %v1530_v33  ;;  %1666 = vst [vmem:[%s2408_s21 + $0x50] sm:$0xff] %v1630_v34   ;;  %v625_v35 = vpop.f32.mrb[40].mxu0  ;;  %v1738_v36 = vpop.f32.mrb[40].mxu1 }
 0x1a3   : > { %v626_v38 = vadd.f32 %v625_v35, %v2337_v15  ;;  %v627_v39 = vpop.f32.mrb[41].mxu0  ;;  %v814_v11 = vpop.f32.mrb[41].mxu1  ;;  %v823_v43 = vadd.f32 %v1738_v36, %v2394_v37 }
 0x1a4   : > { %v628_v40 = vadd.f32 %v627_v39, %v2340_v0  ;;  %v629_v41 = vpop.f32.mrb[42].mxu0  ;;  %v1739_v42 = vpop.f32.mrb[42].mxu1  ;;  %v815_v48 = vadd.f32 %v814_v11, %v2394_v37 }
 0x1a5   : > { %v630_v44 = vadd.f32 %v629_v41, %v2337_v15  ;;  %v826_v45 = vadd.f32 %v1739_v42, %v2394_v37  ;;  %v631_v13 = vpop.f32.mrb[43].mxu0  ;;  %v817_v46 = vpop.f32.mrb[43].mxu1 }
 0x1a6   : > { %v1531_v47 = vpack.c.bf16 %v628_v40, %v626_v38  ;;  %v632_v49 = vadd.f32 %v631_v13, %v2340_v0  ;;  %v818_v50 = vadd.f32 %v817_v46, %v2394_v37 }
 0x1a7   : > { %v1645_v51 = vpack.c.bf16 %v826_v45, %v823_v43 }
 0x1a8   : > { %1057 = vst [vmem:[%s2352_s27 + $0xa0] sm:$0xff] %v1531_v47  ;;  %v1532_v52 = vpack.c.bf16 %v632_v49, %v630_v44  ;;  %v1640_v53 = vpack.c.bf16 %v818_v50, %v815_v48 }
 0x1a9   : > { %1669 = vst [vmem:[%s2408_s21 + $0x68] sm:$0xff] %v1645_v51  }
 0x1aa   : > { %1058 = vst [vmem:[%s2352_s27 + $0xa8] sm:$0xff] %v1532_v52  ;;  %1668 = vst [vmem:[%s2408_s21 + $0x60] sm:$0xff] %v1640_v53   ;;  %v635_v54 = vpop.f32.mrb[44].mxu0  ;;  %v1742_v55 = vpop.f32.mrb[44].mxu1 }
 0x1ab   : > { %v636_v56 = vadd.f32 %v635_v54, %v2337_v15  ;;  %v637_v57 = vpop.f32.mrb[45].mxu0  ;;  %v830_v58 = vpop.f32.mrb[45].mxu1  ;;  %v839_v62 = vadd.f32 %v1742_v55, %v2394_v37 }
 0x1ac   : > { %v638_v59 = vadd.f32 %v637_v57, %v2340_v0  ;;  %v639_v60 = vpop.f32.mrb[46].mxu0  ;;  %v1743_v61 = vpop.f32.mrb[46].mxu1  ;;  %v831_v5 = vadd.f32 %v830_v58, %v2394_v37 }
 0x1ad   : > { %v640_v63 = vadd.f32 %v639_v60, %v2337_v15  ;;  %v842_v1 = vadd.f32 %v1743_v61, %v2394_v37  ;;  %v641_v2 = vpop.f32.mrb[47].mxu0  ;;  %v833_v3 = vpop.f32.mrb[47].mxu1 }
 0x1ae   : > { %v1533_v4 = vpack.c.bf16 %v638_v59, %v636_v56  ;;  %v642_v6 = vadd.f32 %v641_v2, %v2340_v0  ;;  %v834_v7 = vadd.f32 %v833_v3, %v2394_v37 }
 0x1af   : > { %v1655_v15 = vpack.c.bf16 %v842_v1, %v839_v62 }
 0x1b0   : > { %1059 = vst [vmem:[%s2352_s27 + $0xb0] sm:$0xff] %v1533_v4  ;;  %v1534_v8 = vpack.c.bf16 %v642_v6, %v640_v63  ;;  %v1650_v9 = vpack.c.bf16 %v834_v7, %v831_v5 }
 0x1b1   : > { %1671 = vst [vmem:[%s2408_s21 + $0x78] sm:$0xff] %v1655_v15  }
 0x1b2   : > { %1060 = vst [vmem:[%s2352_s27 + $0xb8] sm:$0xff] %v1534_v8  ;;  %1670 = vst [vmem:[%s2408_s21 + $0x70] sm:$0xff] %v1650_v9  }
 0x1b3   : > { %1950 = shalt.err (!%p1947_p5)
}
 0x1b4   : > { %s1951_s27 = scalar_lea.hbm %s2492_s30, 2048  ;;  %s1955_s24 = scalar_lea.hbm %s2589_s3, 4096 }
 0x1b5   : > { %p1952_p9 = scmp.ne.s32.totalorder %s2492_s30, %s1951_s27  ;;  %p1956_p3 = scmp.lt.u32.totalorder %s2492_s30, %s2589_s3 }
 0x1b6   : > { %p1957_p7 = scmp.lt.u32.totalorder %s1955_s24, %s1951_s27  ;;  %p1959_p4 = scmp.lt.u32.totalorder %s1951_s27, %s2492_s30 }
 0x1b7   : > { %p1953_p1 = pnand %p1952_p9, %p2191_p10 }
 0x1b8   : > { %p1958_p13 = por %p1957_p7, %p1956_p3 }
 0x1b9   : > { %p1954_p2 = pneg %p1953_p1 }
 0x1ba   : > { %p1960_p6 = por %p1959_p4, %p1958_p13 }
 0x1bc   : > { %p1961_p8 = pnand %p1960_p6, %p1954_p2 }
 0x1be   : > { %1964 = shalt.err (!%p1961_p8)
}
 0x1bf   : > { %s2065_s11 = smov 64   ;;  %s2066_s23 = smov 4  }
 0x1c0   : > { %1766 = dma.vmem_to_hbm [thread:$0]  (%p2191_p10), %s2502_s28, 2048, %s2492_s30, %s1230_s29, %s2065_s11, %s2065_s11, %s2066_s23  }
 0x1c1   : > { %s1235_s25 = scalar_lea.sflag [#allocation9], %s2247_s7  ;;  %s1965_s14 = scalar_lea.vmem %s2510_s9, 4096 }
 0x1c2   : > { %p1966_p12 = scmp.ne.s32.totalorder %s2510_s9, %s1965_s14  ;;  %s2067_s22 = smov [#allocation8]  }
 0x1c3   : > { %s1969_s27 = sshll.u32 %s2067_s22, 4  ;;  %s1970_s27 = int_to_ptr.vmem [resolvable:$false] %s1969_s27 }
 0x1c4   : > { %p1967_p11 = pnand %p1966_p12, %p2191_p10  ;;  %s1971_s21 = scalar_lea.vmem %s1970_s27, 8192 }
 0x1c5   : > { %p1972_p5 = scmp.lt.s32.totalorder %s2510_s9, %s1970_s27  ;;  %p1973_p9 = scmp.lt.s32.totalorder %s1971_s21, %s1965_s14 }
 0x1c6   : > { %p1968_p0 = pneg %p1967_p11 }
 0x1c7   : > { %p1974_p1 = por %p1973_p9, %p1972_p5 }
 0x1c9   : > { %p1975_p2 = pnand %p1974_p1, %p1968_p0 }
 0x1cb   : > { %1978 = shalt.err (!%p1975_p2)
}
 0x1cc   : > { %s1979_s28 = scalar_lea.hbm %s2508_s12, 4096  ;;  %s1983_s13 = scalar_lea.hbm %s2590_s4, 8192 }
 0x1cd   : > { %p1980_p3 = scmp.ne.s32.totalorder %s2508_s12, %s1979_s28  ;;  %p1984_p4 = scmp.lt.u32.totalorder %s2508_s12, %s2590_s4 }
 0x1ce   : > { %p1985_p6 = scmp.lt.u32.totalorder %s1983_s13, %s1979_s28  ;;  %p1987_p12 = scmp.lt.u32.totalorder %s1979_s28, %s2508_s12 }
 0x1cf   : > { %p1981_p7 = pnand %p1980_p3, %p2191_p10 }
 0x1d0   : > { %p1986_p8 = por %p1985_p6, %p1984_p4 }
 0x1d1   : > { %p1982_p13 = pneg %p1981_p7 }
 0x1d2   : > { %p1988_p11 = por %p1987_p12, %p1986_p8 }
 0x1d4   : > { %p1989_p0 = pnand %p1988_p11, %p1982_p13 }
 0x1d6   : > { %1992 = shalt.err (!%p1989_p0)
}
 0x1d7   : > { %s2068_s18 = smov 128   ;;  %s2069_s11 = smov 8  }
 0x1d8   : > { %1767 = dma.vmem_to_hbm [thread:$0]  (%p2191_p10), %s2510_s9, 4096, %s2508_s12, %s1235_s25, %s2068_s18, %s2068_s18, %s2069_s11  }
 0x1d9 PF: > { %s1284_s23 = sand.u32 1, %s2035_s15   ;;  %p2608_p5 = scmp.ne.s32.totalorder %s2598_s26, 0 }
 0x1da   : > { %p2609_p9 = scmp.ge.s32.totalorder %s2055_s20, 2  ;;  %s1285_s14 = scalar_lea.sflag [#allocation4], %s1284_s23 }
 0x1dc   : > { %p1779_p1 = pnand %p2609_p9, %p2608_p5 }
 0x1de   : > { %2026 = dma.done.wait (!%p1779_p1), %s1285_s14, 2048  }
 0x1df   : > { %2028 = vsyncadd (!%p1779_p1), %s1285_s14, 4294965248  ;;  %s1294_s22 = scalar_lea.sflag [#allocation9], %s1284_s23 }
 0x1e0   : > { %2030 = dma.done.wait (!%p1779_p1), %s1294_s22, 4096  }
 0x1e1   : > { %2032 = vsyncadd (!%p1779_p1), %s1294_s22, 4294963200  ;;  %s25_s20 = sadd.s32 1, %s2055_s20   ;;  %s2610_s15 = smov %s2039_s16 }
 0x1e2   : > { %p22_p2 = scmp.ge.s32.totalorder %s25_s20, 4   ;;  %s2611_s16 = smov %s2043_s17 }
 0x1e3   : > { %s2612_s17 = smov %s2200_s10  ;;  %s2613_s18 = smov %s2051_s19 }
 0x1e4   : > { %s2614_s19 = smov %s2616_s5  ;;  %24 = sbr.rel (!%p22_p2) target bundleno = 9 (0x9), region = 98 }
 0x1eb   :  { %1299 = vsyncpa [#allocation3], 1 }
 0x1ec   :  { %1301 = vsyncpa [#allocation3 + $0x1], 1 }
 0x1ed   :  { %1302 = vsyncpa [#allocation6], 1 }
 0x1ee   :  { %1303 = vsyncpa [#allocation4], 1 }
 0x1ef   :  { %1305 = vsyncpa [#allocation4 + $0x1], 1 }
 0x1f0   :  { %1306 = vsyncpa [#allocation9], 1 }
 0x1f1   :  { %1308 = vsyncpa [#allocation9 + $0x1], 1 }

</bundles_post_ra>
